<compile_context>
chip_gen: v7x
topology: tpu7x:2x2x1
jax: 0.10.0
libtpu: 0.0.40
codegen_flags: <defaults>
</compile_context>

<pallas_src>
import jax
import jax.numpy as jnp
from jax import lax
from jax.experimental import pallas as pl
from jax.experimental.pallas import tpu as pltpu

LANE = 128
SUBLANE = 8


def _cdiv(a, b):
    return -(-a // b)


def _round_up(a, b):
    return _cdiv(a, b) * b


def _make_dice_bce_kernel(n_valid, tile_rows, last_tile_row0, needs_mask):
    """Builds the kernel with all shape / masking parameters baked in statically."""
    folds = tile_rows // SUBLANE

    def fold(v):
        # (tile_rows, 128) -> (8, 128); leading-axis sum = VPU adds only.
        # Aligned with the native (8,128) tile, so the reshape is layout-free.
        return v.reshape(folds, SUBLANE, LANE).sum(axis=0)

    def accumulate(x, t, out_ref, mask):
        # Single exp per element, reused by the sigmoid and the stable BCE term.
        e = jnp.exp(-jnp.abs(x))
        denom = 1.0 + e
        # Approximate EUP reciprocal + one Newton-Raphson step on the VALU.
        inv = pl.reciprocal(denom, approx=True)
        inv = inv * (2.0 - denom * inv)
        sig = jnp.where(x >= 0.0, 1.0, e) * inv
        # Numerically stable BCE-with-logits (matches torch BCEWithLogitsLoss):
        #   max(x, 0) - x * t + log1p(exp(-|x|))
        bce = jnp.maximum(x, 0.0) - x * t + jnp.log1p(e)
        inter = sig * t
        if mask is not None:
            sig = jnp.where(mask, sig, 0.0)
            t = jnp.where(mask, t, 0.0)
            bce = jnp.where(mask, bce, 0.0)
            inter = jnp.where(mask, inter, 0.0)
        out_ref[0] += fold(inter)   # intersection
        out_ref[1] += fold(sig)     # sum(sigmoid(x))
        out_ref[2] += fold(t)       # sum(targets)
        out_ref[3] += fold(bce)     # sum(elementwise BCE)

    def kernel(x_ref, t_ref, out_ref):
        s = pl.program_id(0)        # split axis (per-core on v7x)
        i = pl.program_id(1)        # reduction axis

        @pl.when(i == 0)
        def _():
            out_ref[...] = jnp.zeros_like(out_ref)

        x = x_ref[...].astype(jnp.float32)
        t = t_ref[...].astype(jnp.float32)

        if not needs_mask:
            accumulate(x, t, out_ref, None)
        else:
            is_last = jnp.logical_and(s == pl.num_programs(0) - 1,
                                      i == pl.num_programs(1) - 1)

            @pl.when(jnp.logical_not(is_last))
            def _():
                accumulate(x, t, out_ref, None)

            @pl.when(is_last)
            def _():
                # Mask out zero-padding and out-of-bounds rows of the
                # overhanging final block.  (int32 index math: fine for
                # element counts < 2**31.)
                row_ids = lax.broadcasted_iota(jnp.int32, (tile_rows, LANE), 0)
                col_ids = lax.broadcasted_iota(jnp.int32, (tile_rows, LANE), 1)
                idx = (last_tile_row0 + row_ids) * LANE + col_ids
                accumulate(x, t, out_ref, idx < n_valid)

    return kernel


def dice_bce_loss(inputs, targets, *, bce_weight=0.5, dice_weight=0.5,
                  smooth=1.0, max_tile_rows=2048, num_splits=1,
                  split_core_parallel=False, cast_targets_to_bf16=None):
    """Pallas TPU implementation of DiceBCELoss.forward (returns scalar f32).

    For v7x pass num_splits=2, split_core_parallel=True to shard the outer
    grid axis across both TensorCores.  On v5e/v6e keep the defaults.
    """
    assert inputs.shape == targets.shape
    n = int(inputs.size)

    x_flat = inputs.reshape(-1)
    t_flat = targets.reshape(-1)

    # Auto bf16 cast only for hard (bool / integer) masks -- bit exact, halves
    # target HBM traffic.  Soft float labels are kept as-is.
    if cast_targets_to_bf16 is None:
        cast_targets_to_bf16 = jnp.dtype(targets.dtype).kind in ("b", "i", "u")
    if cast_targets_to_bf16:
        t_flat = t_flat.astype(jnp.bfloat16)

    # Sub-32-bit dtypes pack along sublanes -> bump the row-tile multiple.
    row_mult = SUBLANE
    for dt in (x_flat.dtype, t_flat.dtype):
        itemsize = jnp.dtype(dt).itemsize
        if itemsize == 2:
            row_mult = max(row_mult, 16)
        elif itemsize == 1:
            row_mult = max(row_mult, 32)

    if n % LANE == 0:
        # Common case: zero-copy reshape to a lane-dense slab, no padding pass.
        rows = n // LANE
    else:
        # Truly ragged tail: zero-pad up to whole (row_mult, 128) tiles.  The
        # in-kernel mask excludes padded elements, so zeros are safe for every
        # dtype.  TODO(synk): this still costs one extra HBM pass for
        # n % 128 != 0; unavoidable without a manual-DMA (pl.ANY) gather path.
        padded_n = _round_up(n, row_mult * LANE)
        pad = padded_n - n
        x_flat = jnp.pad(x_flat, (0, pad))
        t_flat = jnp.pad(t_flat, (0, pad))
        rows = padded_n // LANE

    x2d = x_flat.reshape(rows, LANE)
    t2d = t_flat.reshape(rows, LANE)

    tile_rows = min(_round_up(max_tile_rows, row_mult),
                    _round_up(_cdiv(rows, max(num_splits, 1)), row_mult))
    tile_rows = max(tile_rows, row_mult)
    total_tiles = _cdiv(rows, tile_rows)
    if num_splits < 1 or total_tiles % num_splits != 0:
        num_splits = 1            # avoid fully out-of-bounds blocks
    steps = total_tiles // num_splits

    # Last block may overhang the array (Pallas pads it; OOB reads are
    # masked in-kernel), and padded elements must be excluded.
    needs_mask = (total_tiles * tile_rows * LANE) != n
    last_tile_row0 = (total_tiles - 1) * tile_rows

    kernel = _make_dice_bce_kernel(n, tile_rows, last_tile_row0, needs_mask)

    in_map = lambda s, i: (s * steps + i, 0)
    out_map = lambda s, i: (s, 0, 0, 0)

    n_elems = rows * LANE
    cost = pl.CostEstimate(
        flops=16 * n_elems,
        transcendentals=3 * n_elems,
        bytes_accessed=(n_elems * (x2d.dtype.itemsize + t2d.dtype.itemsize)
                        + num_splits * 4 * SUBLANE * LANE * 4),
    )

    if split_core_parallel:
        dim_sems = (pltpu.CORE_PARALLEL, pltpu.ARBITRARY)   # v7x: 2 TCs/chip
    else:
        dim_sems = ("parallel", "arbitrary")

    partials = pl.pallas_call(
        kernel,
        out_shape=jax.ShapeDtypeStruct((num_splits, 4, SUBLANE, LANE),
                                       jnp.float32),
        grid_spec=pltpu.PrefetchScalarGridSpec(
            num_scalar_prefetch=0,
            grid=(num_splits, steps),
            in_specs=[
                pl.BlockSpec((tile_rows, LANE), in_map),
                pl.BlockSpec((tile_rows, LANE), in_map),
            ],
            out_specs=pl.BlockSpec((None, 4, SUBLANE, LANE), out_map),
        ),
        compiler_params=pltpu.CompilerParams(dimension_semantics=dim_sems),
        cost_estimate=cost,
    )(x2d, t2d)

    # Tiny finalize in plain JAX: reduce the (num_splits, 4, 8, 128) partials
    # and do the scalar dice / BCE combine.
    sums = partials.sum(axis=(0, 2, 3))
    intersection, sum_sig, sum_t, sum_bce = sums[0], sums[1], sums[2], sums[3]
    dice = (2.0 * intersection + smooth) / (sum_sig + sum_t + smooth)
    bce_loss = sum_bce / n
    return bce_weight * bce_loss + dice_weight * (1.0 - dice)


def dice_bce_loss_ref(inputs, targets, *, bce_weight=0.5, dice_weight=0.5,
                      smooth=1.0):
    """Pure-JAX reference (mirrors the PyTorch module exactly)."""
    x = inputs.astype(jnp.float32)
    t = targets.astype(jnp.float32)
    sig = jax.nn.sigmoid(x).reshape(-1)
    tf = t.reshape(-1)
    intersection = jnp.sum(sig * tf)
    dice = (2.0 * intersection + smooth) / (jnp.sum(sig) + jnp.sum(tf) + smooth)
    bce = jnp.mean(jnp.maximum(x, 0.0) - x * t + jnp.log1p(jnp.exp(-jnp.abs(x))))
    return bce_weight * bce + dice_weight * (1.0 - dice)


if __name__ == "__main__":
    key = jax.random.PRNGKey(0)
    k1, k2, k3, k4, k5, k6 = jax.random.split(key, 6)

    # 1) NCHW logits + binary targets, lane-aligned element count (zero-copy path).
    x = jax.random.normal(k1, (2, 4, 16, 16), dtype=jnp.float32) * 2.0
    t = (jax.random.uniform(k2, (2, 4, 16, 16)) > 0.5).astype(jnp.float32)
    loss = dice_bce_loss(x, t)
    jax.block_until_ready(loss)
    ref = dice_bce_loss_ref(x, t)
    assert jnp.allclose(loss, ref, rtol=1e-5, atol=1e-5), (loss, ref)

    # 2) Ragged element count (2*3*7*11 = 462, not a multiple of 128):
    #    exercises the zero-pad + in-kernel mask fallback.
    x2 = jax.random.normal(k3, (2, 3, 7, 11), dtype=jnp.float32) * 2.0
    t2 = (jax.random.uniform(k4, (2, 3, 7, 11)) > 0.5).astype(jnp.float32)
    loss2 = dice_bce_loss(x2, t2)
    jax.block_until_ready(loss2)
    ref2 = dice_bce_loss_ref(x2, t2)
    assert jnp.allclose(loss2, ref2, rtol=1e-5, atol=1e-5), (loss2, ref2)

    # 3) Lane-aligned but tile-unaligned rows (small max_tile_rows forces an
    #    overhanging final block): exercises the no-padding in-kernel mask.
    x3 = jax.random.normal(k5, (4, 5, 8, 32), dtype=jnp.float32) * 2.0
    t3 = (jax.random.uniform(k6, (4, 5, 8, 32)) > 0.5).astype(jnp.float32)
    loss3 = dice_bce_loss(x3, t3, max_tile_rows=16)
    jax.block_until_ready(loss3)
    ref3 = dice_bce_loss_ref(x3, t3)
    assert jnp.allclose(loss3, ref3, rtol=1e-5, atol=1e-5), (loss3, ref3)

    print("KERNEL_OK")
</pallas_src>

<mosaic_0001>
module attributes {stable_mosaic.version = 11 : i64} {
  func.func @kernel(%arg0: i32, %arg1: i32, %arg2: memref<16x128xf32, #tpu.memory_space<vmem>>, %arg3: memref<16x128xf32, #tpu.memory_space<vmem>>, %arg4: memref<1x4x8x128xf32, #tpu.memory_space<vmem>>) attributes {dimension_semantics = [#tpu.dimension_semantics<parallel>, #tpu.dimension_semantics<arbitrary>], iteration_bounds = array<i64: 1, 1>, scalar_prefetch = 0 : i64, scratch_operands = 0 : i64, tpu.core_type = #tpu.core_type<tc>, window_params = [{transform_indices = @transform_0, window_bounds = array<i64: 16, 128>}, {transform_indices = @transform_1, window_bounds = array<i64: 16, 128>}, {transform_indices = @transform_2, window_bounds = array<i64: 1, 4, 8, 128>}]} {
    %c0_i32 = arith.constant 0 : i32
    %0 = arith.cmpi eq, %arg1, %c0_i32 : i32
    %1 = arith.extui %0 : i1 to i32
    %c0_i32_0 = arith.constant 0 : i32
    %2 = arith.cmpi ne, %1, %c0_i32_0 : i32
    scf.if %2 {
      %cst_42 = arith.constant 0.000000e+00 : f32
      %60 = vector.broadcast %cst_42 : f32 to vector<4x8x128xf32>
      %c0_43 = arith.constant 0 : index
      %c0_44 = arith.constant 0 : index
      %c0_45 = arith.constant 0 : index
      %c0_46 = arith.constant 0 : index
      %61 = vector.load %arg4[%c0_43, %c0_44, %c0_45, %c0_46] : memref<1x4x8x128xf32, #tpu.memory_space<vmem>>, vector<1x4x8x128xf32>
      %62 = vector.shape_cast %61 : vector<1x4x8x128xf32> to vector<4x8x128xf32>
      %63 = vector.shape_cast %60 : vector<4x8x128xf32> to vector<1x4x8x128xf32>
      tpu.vector_store %arg4[%c0_43, %c0_44, %c0_45, %c0_46], %63 {strides = array<i32>} : memref<1x4x8x128xf32, #tpu.memory_space<vmem>>, vector<1x4x8x128xf32>,
    } else {
    }
    %c0 = arith.constant 0 : index
    %c0_1 = arith.constant 0 : index
    %3 = vector.load %arg2[%c0, %c0_1] : memref<16x128xf32, #tpu.memory_space<vmem>>, vector<16x128xf32>
    %c0_2 = arith.constant 0 : index
    %c0_3 = arith.constant 0 : index
    %4 = vector.load %arg3[%c0_2, %c0_3] : memref<16x128xf32, #tpu.memory_space<vmem>>, vector<16x128xf32>
    %5 = math.absf %3 : vector<16x128xf32>
    %cst = arith.constant 0.000000e+00 : f32
    %6 = vector.broadcast %cst : f32 to vector<16x128xf32>
    %7 = arith.subf %6, %5 : vector<16x128xf32>
    %8 = math.exp %7 : vector<16x128xf32>
    %cst_4 = arith.constant 1.000000e+00 : f32
    %9 = vector.broadcast %cst_4 : f32 to vector<16x128xf32>
    %10 = arith.addf %9, %8 : vector<16x128xf32>
    %11 = tpu.reciprocal %10 {approx = true} : vector<16x128xf32> -> vector<16x128xf32>
    %12 = arith.mulf %10, %11 : vector<16x128xf32>
    %cst_5 = arith.constant 2.000000e+00 : f32
    %13 = vector.broadcast %cst_5 : f32 to vector<16x128xf32>
    %14 = arith.subf %13, %12 : vector<16x128xf32>
    %15 = arith.mulf %11, %14 : vector<16x128xf32>
    %cst_6 = arith.constant 0.000000e+00 : f32
    %16 = vector.broadcast %cst_6 : f32 to vector<16x128xf32>
    %17 = arith.cmpf oge, %3, %16 : vector<16x128xf32>
    %cst_7 = arith.constant 1.000000e+00 : f32
    %18 = vector.broadcast %cst_7 : f32 to vector<16x128xf32>
    %19 = arith.select %17, %18, %8 : vector<16x128xi1>, vector<16x128xf32>
    %20 = arith.mulf %19, %15 : vector<16x128xf32>
    %cst_8 = arith.constant 0.000000e+00 : f32
    %21 = vector.broadcast %cst_8 : f32 to vector<16x128xf32>
    %22 = arith.maximumf %3, %21 : vector<16x128xf32>
    %23 = arith.mulf %3, %4 : vector<16x128xf32>
    %24 = arith.subf %22, %23 : vector<16x128xf32>
    %25 = math.log1p %8 : vector<16x128xf32>
    %26 = arith.addf %24, %25 : vector<16x128xf32>
    %27 = arith.mulf %20, %4 : vector<16x128xf32>
    %c0_9 = arith.constant 0 : index
    %c0_10 = arith.constant 0 : index
    %c0_11 = arith.constant 0 : index
    %c0_12 = arith.constant 0 : index
    %28 = vector.load %arg4[%c0_9, %c0_10, %c0_11, %c0_12] : memref<1x4x8x128xf32, #tpu.memory_space<vmem>>, vector<1x1x8x128xf32>
    %29 = vector.shape_cast %28 : vector<1x1x8x128xf32> to vector<8x128xf32>
    %30 = vector.shape_cast %27 : vector<16x128xf32> to vector<2x8x128xf32>
    %cst_13 = arith.constant dense<0.000000e+00> : vector<8x128xf32>
    %31 = vector.multi_reduction <add>, %30, %cst_13 [0] : vector<2x8x128xf32> to vector<8x128xf32>
    %32 = arith.addf %29, %31 : vector<8x128xf32>
    %c0_14 = arith.constant 0 : index
    %c0_15 = arith.constant 0 : index
    %c0_16 = arith.constant 0 : index
    %c0_17 = arith.constant 0 : index
    %33 = vector.load %arg4[%c0_14, %c0_15, %c0_16, %c0_17] : memref<1x4x8x128xf32, #tpu.memory_space<vmem>>, vector<1x1x8x128xf32>
    %34 = vector.shape_cast %33 : vector<1x1x8x128xf32> to vector<8x128xf32>
    %35 = vector.shape_cast %32 : vector<8x128xf32> to vector<1x1x8x128xf32>
    tpu.vector_store %arg4[%c0_14, %c0_15, %c0_16, %c0_17], %35 {strides = array<i32>} : memref<1x4x8x128xf32, #tpu.memory_space<vmem>>, vector<1x1x8x128xf32>,
    %c0_18 = arith.constant 0 : index
    %c1 = arith.constant 1 : index
    %c0_19 = arith.constant 0 : index
    %c0_20 = arith.constant 0 : index
    %36 = vector.load %arg4[%c0_18, %c1, %c0_19, %c0_20] : memref<1x4x8x128xf32, #tpu.memory_space<vmem>>, vector<1x1x8x128xf32>
    %37 = vector.shape_cast %36 : vector<1x1x8x128xf32> to vector<8x128xf32>
    %38 = vector.shape_cast %20 : vector<16x128xf32> to vector<2x8x128xf32>
    %cst_21 = arith.constant dense<0.000000e+00> : vector<8x128xf32>
    %39 = vector.multi_reduction <add>, %38, %cst_21 [0] : vector<2x8x128xf32> to vector<8x128xf32>
    %40 = arith.addf %37, %39 : vector<8x128xf32>
    %c0_22 = arith.constant 0 : index
    %c1_23 = arith.constant 1 : index
    %c0_24 = arith.constant 0 : index
    %c0_25 = arith.constant 0 : index
    %41 = vector.load %arg4[%c0_22, %c1_23, %c0_24, %c0_25] : memref<1x4x8x128xf32, #tpu.memory_space<vmem>>, vector<1x1x8x128xf32>
    %42 = vector.shape_cast %41 : vector<1x1x8x128xf32> to vector<8x128xf32>
    %43 = vector.shape_cast %40 : vector<8x128xf32> to vector<1x1x8x128xf32>
    tpu.vector_store %arg4[%c0_22, %c1_23, %c0_24, %c0_25], %43 {strides = array<i32>} : memref<1x4x8x128xf32, #tpu.memory_space<vmem>>, vector<1x1x8x128xf32>,
    %c0_26 = arith.constant 0 : index
    %c2 = arith.constant 2 : index
    %c0_27 = arith.constant 0 : index
    %c0_28 = arith.constant 0 : index
    %44 = vector.load %arg4[%c0_26, %c2, %c0_27, %c0_28] : memref<1x4x8x128xf32, #tpu.memory_space<vmem>>, vector<1x1x8x128xf32>
    %45 = vector.shape_cast %44 : vector<1x1x8x128xf32> to vector<8x128xf32>
    %46 = vector.shape_cast %4 : vector<16x128xf32> to vector<2x8x128xf32>
    %cst_29 = arith.constant dense<0.000000e+00> : vector<8x128xf32>
    %47 = vector.multi_reduction <add>, %46, %cst_29 [0] : vector<2x8x128xf32> to vector<8x128xf32>
    %48 = arith.addf %45, %47 : vector<8x128xf32>
    %c0_30 = arith.constant 0 : index
    %c2_31 = arith.constant 2 : index
    %c0_32 = arith.constant 0 : index
    %c0_33 = arith.constant 0 : index
    %49 = vector.load %arg4[%c0_30, %c2_31, %c0_32, %c0_33] : memref<1x4x8x128xf32, #tpu.memory_space<vmem>>, vector<1x1x8x128xf32>
    %50 = vector.shape_cast %49 : vector<1x1x8x128xf32> to vector<8x128xf32>
    %51 = vector.shape_cast %48 : vector<8x128xf32> to vector<1x1x8x128xf32>
    tpu.vector_store %arg4[%c0_30, %c2_31, %c0_32, %c0_33], %51 {strides = array<i32>} : memref<1x4x8x128xf32, #tpu.memory_space<vmem>>, vector<1x1x8x128xf32>,
    %c0_34 = arith.constant 0 : index
    %c3 = arith.constant 3 : index
    %c0_35 = arith.constant 0 : index
    %c0_36 = arith.constant 0 : index
    %52 = vector.load %arg4[%c0_34, %c3, %c0_35, %c0_36] : memref<1x4x8x128xf32, #tpu.memory_space<vmem>>, vector<1x1x8x128xf32>
    %53 = vector.shape_cast %52 : vector<1x1x8x128xf32> to vector<8x128xf32>
    %54 = vector.shape_cast %26 : vector<16x128xf32> to vector<2x8x128xf32>
    %cst_37 = arith.constant dense<0.000000e+00> : vector<8x128xf32>
    %55 = vector.multi_reduction <add>, %54, %cst_37 [0] : vector<2x8x128xf32> to vector<8x128xf32>
    %56 = arith.addf %53, %55 : vector<8x128xf32>
    %c0_38 = arith.constant 0 : index
    %c3_39 = arith.constant 3 : index
    %c0_40 = arith.constant 0 : index
    %c0_41 = arith.constant 0 : index
    %57 = vector.load %arg4[%c0_38, %c3_39, %c0_40, %c0_41] : memref<1x4x8x128xf32, #tpu.memory_space<vmem>>, vector<1x1x8x128xf32>
    %58 = vector.shape_cast %57 : vector<1x1x8x128xf32> to vector<8x128xf32>
    %59 = vector.shape_cast %56 : vector<8x128xf32> to vector<1x1x8x128xf32>
    tpu.vector_store %arg4[%c0_38, %c3_39, %c0_40, %c0_41], %59 {strides = array<i32>} : memref<1x4x8x128xf32, #tpu.memory_space<vmem>>, vector<1x1x8x128xf32>,
    return
  }
  func.func @transform_0(%arg0: i32, %arg1: i32) -> (i32, i32) {
    %c1_i32 = arith.constant 1 : i32
    %0 = arith.muli %arg0, %c1_i32 : i32
    %1 = arith.addi %0, %arg1 : i32
    %c0_i32 = arith.constant 0 : i32
    %c0_i32_0 = arith.constant 0 : i32
    return %1, %c0_i32 : i32, i32
  }
  func.func @transform_1(%arg0: i32, %arg1: i32) -> (i32, i32) {
    %c1_i32 = arith.constant 1 : i32
    %0 = arith.muli %arg0, %c1_i32 : i32
    %1 = arith.addi %0, %arg1 : i32
    %c0_i32 = arith.constant 0 : i32
    %c0_i32_0 = arith.constant 0 : i32
    return %1, %c0_i32 : i32, i32
  }
  func.func @transform_2(%arg0: i32, %arg1: i32) -> (i32, i32, i32, i32) {
    %c0_i32 = arith.constant 0 : i32
    %c0_i32_0 = arith.constant 0 : i32
    %c0_i32_1 = arith.constant 0 : i32
    %c0_i32_2 = arith.constant 0 : i32
    return %arg0, %c0_i32, %c0_i32_0, %c0_i32_1 : i32, i32, i32, i32
  }
}

</mosaic_0001>

<bundles_post_ra>
// kernel: tpu_custom_call.1
= control target key start
LH: loop header
LB: loop body
LE: loop exit
PB: predicated region body
PF: predicated region fallthrough
CT: control target
= control target key end

     0   :  { %7 = vsyncpa [#allocation3], 0  ;;  %s309_s0 = inlined_call_operand.hbm [shape: f32[16,128], index: 0, kind: input, shape index: {}]   ;;  %s310_s1 = inlined_call_operand.hbm [shape: f32[16,128], index: 1, kind: input, shape index: {}]   ;;  %s311_s2 = inlined_call_operand.hbm [shape: f32[1,4,8,128], index: 2, kind: output, shape index: {}]  }
   0x1   :  { %8 = vsyncpa [#allocation6], 0 }
   0x2   :  { %9 = vsyncpa [#allocation4], 0  ;;  %s243_s9 = smov [#allocation2]   ;;  %s171_s13 = scalar_lea.hbm %s309_s0, 256 }
   0x3   :  { %s19_s10 = sshll.u32 %s243_s9, 4  ;;  %p172_p0 = scmp.ne.s32.totalorder %s309_s0, %s171_s13  ;;  %s20_s10 = int_to_ptr.vmem [resolvable:$true] %s19_s10 }
   0x4   :  { %p175_p1 = scmp.lt.u32.totalorder %s171_s13, %s309_s0 }
   0x6   :  { %p177_p2 = pnand %p175_p1, %p172_p0 }
   0x8   :  { %180 = shalt.err (!%p177_p2)
}
   0x9   :  { %s181_s18 = scalar_lea.vmem %s20_s10, 256  ;;  %p186_p4 = scmp.lt.s32.totalorder %s20_s10, %s20_s10 }
   0xa   :  { %p182_p3 = scmp.ne.s32.totalorder %s20_s10, %s181_s18  ;;  %p187_p5 = scmp.lt.s32.totalorder %s181_s18, %s181_s18 }
   0xc   :  { %p188_p6 = por %p187_p5, %p186_p4 }
   0xe   :  { %p189_p7 = pnand %p188_p6, %p182_p3 }
  0x10   :  { %192 = shalt.err (!%p189_p7)
}
  0x11   :  { %s244_s19 = smov 128   ;;  %s245_s20 = smov 8  }
  0x12   :  { %25 = dma.hbm_to_vmem [thread:$0]  %s309_s0, 256, %s20_s10, [#allocation3], %s244_s19, %s244_s19, %s245_s20  }
  0x13   :  { %s246_s23 = smov [#allocation5]   ;;  %s193_s27 = scalar_lea.hbm %s310_s1, 256 }
  0x14   :  { %s35_s24 = sshll.u32 %s246_s23, 4  ;;  %p194_p8 = scmp.ne.s32.totalorder %s310_s1, %s193_s27  ;;  %s36_s24 = int_to_ptr.vmem [resolvable:$true] %s35_s24 }
  0x15   :  { %p197_p9 = scmp.lt.u32.totalorder %s193_s27, %s310_s1 }
  0x17   :  { %p199_p10 = pnand %p197_p9, %p194_p8 }
  0x19   :  { %202 = shalt.err (!%p199_p10)
}
  0x1a   :  { %s203_s4 = scalar_lea.vmem %s36_s24, 256  ;;  %p208_p12 = scmp.lt.s32.totalorder %s36_s24, %s36_s24 }
  0x1b   :  { %p204_p11 = scmp.ne.s32.totalorder %s36_s24, %s203_s4  ;;  %p209_p13 = scmp.lt.s32.totalorder %s203_s4, %s203_s4 }
  0x1d   :  { %p210_p0 = por %p209_p13, %p208_p12 }
  0x1f   :  { %p211_p1 = pnand %p210_p0, %p204_p11 }
  0x21   :  { %214 = shalt.err (!%p211_p1)
}
  0x22   :  { %41 = dma.hbm_to_vmem [thread:$0]  %s310_s1, 256, %s36_s24, [#allocation6], %s244_s19, %s244_s19, %s245_s20  }
  0x23   :  { %237 = dma.done.wait [#allocation3], 256  }
  0x24   :  { %238 = vsyncadd [#allocation3], 4294967040 }
  0x25   :  { %239 = dma.done.wait [#allocation6], 256  }
  0x26   :  { %240 = vsyncadd [#allocation6], 4294967040  ;;  %v60_v0 = vld [vmem:[#allocation2] sm:$0xff]  ;;  %v61_v1 = vld [vmem:[#allocation2 + $0x8] sm:$0xff]  ;;  %s247_s1 = smov [#allocation7]  }
  0x27   :  { %v62_v2 = vld [vmem:[#allocation5] sm:$0xff]  ;;  %v63_v3 = vld [vmem:[#allocation5 + $0x8] sm:$0xff]  ;;  %v64_v4 = vand.u32 2147483647, %v60_v0  ;;  %v65_v5 = vand.u32 2147483647, %v61_v1 }
  0x28   :  { %v127_v6 = vadd.f32 %v63_v3, %v62_v2  ;;  %v88_v18 = vmax.f32 %v60_v0, 0.0  ;;  %v90_v19 = vmul.f32 %v62_v2, %v60_v0  ;;  %v89_v22 = vmax.f32 %v61_v1, 0.0  ;;  %s140_s6 = sshll.u32 %s247_s1, 4  ;;  %s141_s6 = int_to_ptr.vmem [resolvable:$true] %s140_s6 }
  0x29   :  { %v66_v7 = vsub.f32 0.0, %v64_v4  ;;  %v67_v8 = vsub.f32 0.0, %v65_v5  ;;  %v91_v23 = vmul.f32 %v63_v3, %v61_v1  ;;  %vm82_vm0 = vcmp.ge.f32.partialorder %v60_v0, 0.0  ;;  %s215_s7 = scalar_lea.vmem %s141_s6, 512  ;;  %p220_p3 = scmp.lt.s32.totalorder %s141_s6, %s141_s6 }
  0x2a   :  { %129 = vst [vmem:[#allocation7 + $0x10] sm:$0xff] %v127_v6  ;;  %vm83_vm1 = vcmp.ge.f32.partialorder %v61_v1, 0.0  ;;  %v92_v31 = vsub.f32 %v88_v18, %v90_v19  ;;  %p216_p2 = scmp.ne.s32.totalorder %s141_s6, %s215_s7  ;;  %p221_p4 = scmp.lt.s32.totalorder %s215_s7, %s215_s7 }
  0x2b   :  { %v68_v9 = vmul.f32 1.442695, %v66_v7  ;;  %v70_v10 = vmul.f32 1.442695, %v67_v8  ;;  %v93_v35 = vsub.f32 %v89_v22, %v91_v23 }
  0x2c   :  { %p222_p5 = por %p221_p4, %p220_p3 }
  0x2d   :  { %159 = vpow2.f32 %v68_v9 }
  0x2e   :  { %161 = vpow2.f32 %v70_v10  ;;  %p223_p6 = pnand %p222_p5, %p216_p2 }
  0x37   :  { %v160_v11 = vpop.eup %159 }
  0x38   :  { %v162_v12 = vpop.eup %161  ;;  %v72_v13 = vadd.f32 1.0, %v160_v11  ;;  %v97_v15 = vmul.f32 -0.5, %v160_v11  ;;  %v100_v20 = vand.u32 2147483647, %v160_v11  ;;  %v84_v38 = vsel %vm82_vm0, 1.0, %v160_v11 }
  0x39   :  { %v73_v14 = vadd.f32 1.0, %v162_v12  ;;  %v106_v16 = vmul.f32 -0.5, %v162_v12  ;;  %v109_v24 = vand.u32 2147483647, %v162_v12  ;;  %v85_v41 = vsel %vm83_vm1, 1.0, %v162_v12 }
  0x3a   :  { %163 = vrcp.f32 %v72_v13  ;;  %v98_v17 = vadd.f32 1.0, %v97_v15  ;;  %vm101_vm2 = vcmp.lt.f32.partialorder %v100_v20, 0.0004427343 }
  0x3b   :  { %165 = vrcp.f32 %v73_v14  ;;  %v107_v21 = vadd.f32 1.0, %v106_v16  ;;  %vm110_vm3 = vcmp.lt.f32.partialorder %v109_v24, 0.0004427343 }
  0x3c   :  { %167 = vlog2.f32 %v72_v13  ;;  %v99_v28 = vmul.f32 %v160_v11, %v98_v17 }
  0x3d   :  { %169 = vlog2.f32 %v73_v14  ;;  %v108_v32 = vmul.f32 %v162_v12, %v107_v21 }
  0x44   :  { %v164_v25 = vpop.eup %163 }
  0x45   :  { %v166_v26 = vpop.eup %165  ;;  %v76_v27 = vmul.f32 %v164_v25, %v72_v13 }
  0x46   :  { %v168_v29 = vpop.eup %167  ;;  %v77_v30 = vmul.f32 %v166_v26, %v73_v14 }
  0x47   :  { %v170_v33 = vpop.eup %169  ;;  %v78_v34 = vsub.f32 2.0, %v76_v27  ;;  %v96_v36 = vmul.f32 0.6931472, %v168_v29 }
  0x48   :  { %v79_v37 = vsub.f32 2.0, %v77_v30  ;;  %v105_v39 = vmul.f32 0.6931472, %v170_v33 }
  0x49   :  { %v80_v40 = vmul.f32 %v164_v25, %v78_v34  ;;  %v102_v42 = vsel %vm101_vm2, %v99_v28, %v96_v36 }
  0x4a   :  { %v81_v43 = vmul.f32 %v166_v26, %v79_v37  ;;  %v111_v44 = vsel %vm110_vm3, %v108_v32, %v105_v39  ;;  %v112_v45 = vadd.f32 %v102_v42, %v92_v31 }
  0x4b   :  { %v86_v46 = vmul.f32 %v84_v38, %v80_v40  ;;  %v113_v47 = vadd.f32 %v111_v44, %v93_v35 }
  0x4c   :  { %v87_v48 = vmul.f32 %v85_v41, %v81_v43 }
  0x4d   :  { %v114_v49 = vmul.f32 %v86_v46, %v62_v2  ;;  %v132_v50 = vadd.f32 %v113_v47, %v112_v45 }
  0x4e   :  { %v115_v51 = vmul.f32 %v87_v48, %v63_v3  ;;  %v122_v52 = vadd.f32 %v87_v48, %v86_v46 }
  0x4f   :  { %134 = vst [vmem:[#allocation7 + $0x18] sm:$0xff] %v132_v50 }
  0x50   :  { %v117_v53 = vadd.f32 %v115_v51, %v114_v49  ;;  %124 = vst [vmem:[#allocation7 + $0x8] sm:$0xff] %v122_v52 }
  0x52   :  { %119 = vst [vmem:[#allocation7] sm:$0xff] %v117_v53 }
  0x53   :  { %226 = shalt.err (!%p223_p6)
}
  0x54   :  { %s227_s10 = scalar_lea.hbm %s311_s2, 512 }
  0x55   :  { %p228_p7 = scmp.ne.s32.totalorder %s311_s2, %s227_s10  ;;  %p231_p8 = scmp.lt.u32.totalorder %s227_s10, %s311_s2 }
  0x57   :  { %p233_p9 = pnand %p231_p8, %p228_p7 }
  0x59   :  { %236 = shalt.err (!%p233_p9)
}
  0x5a   :  { %146 = dma.vmem_to_hbm [thread:$0]  %s141_s6, 512, %s311_s2, [#allocation4], %s244_s19, %s244_s19, %s245_s20  }
  0x5b   :  { %241 = dma.done.wait [#allocation4], 512  }
  0x5c   :  { %242 = vsyncadd [#allocation4], 4294966784 }
  0x5d   :  { %150 = vsyncpa [#allocation3], 1 }
  0x5e   :  { %151 = vsyncpa [#allocation6], 1 }
  0x5f   :  { %152 = vsyncpa [#allocation4], 1 }

</bundles_post_ra>
